<compile_context>
chip_gen: v7x
topology: tpu7x:2x2x1
jax: 0.10.0
libtpu: 0.0.40
codegen_flags: <defaults>
</compile_context>

<pallas_src>
import numpy as np
import jax
import jax.numpy as jnp
from jax.experimental import pallas as pl
from jax.experimental.pallas import tpu as pltpu


# ----------------------------- in-kernel math helpers -----------------------------
def _mish(x):
    # mish(x) = x * tanh(softplus(x)); single-exp, overflow-safe formulation.
    # tanh(softplus(x)) == ((1+e^x)^2 - 1) / ((1+e^x)^2 + 1)
    t = jnp.exp(jnp.minimum(x, 20.0))
    u = (1.0 + t) * (1.0 + t)
    return jnp.where(x > 20.0, x, x * (u - 1.0) * pl.reciprocal(u + 1.0, approx=True))


def _sigmoid(x):
    # EUP reciprocal; exp argument clamped so the approx recip never sees inf.
    return pl.reciprocal(1.0 + jnp.exp(jnp.clip(-x, -60.0, 60.0)), approx=True)


# ----------------------------- fused CBAM kernel -----------------------------
def cbam_kernel(x_ref, w1_ref, b1_ref, w2_ref, b2_ref, mcat_ref, bs_ref, o_ref):
    """One block of B samples per grid step.  x_ref block: (B, C, HW), NCHW layout
    (channels on sublanes, spatial on lanes)."""
    x = x_ref[...]                                   # (B, C, HW)
    b, c, hw = x.shape

    # --- channel attention: global avg pool (lane reduce) -> 1x1 conv -> Mish
    #     -> 1x1 conv -> sigmoid.  (The reference module uses avg-pool only.)
    avg = jnp.sum(x, axis=2) * (1.0 / hw)                                          # (B, C)
    h = _mish(jnp.dot(avg, w1_ref[...], preferred_element_type=jnp.float32) + b1_ref[...])
    ca = _sigmoid(jnp.dot(h, w2_ref[...], preferred_element_type=jnp.float32) + b2_ref[...])
    xc = x * ca[:, :, None]                          # (B, C, HW) channel-attended features

    # --- spatial attention: channel-wise max / mean pooling (sublane reductions),
    #     stacked side-by-side so the 7x7 conv is ONE wide MXU matmul.
    maxp = jnp.max(xc, axis=1)                                                     # (B, HW)
    avgp = jnp.sum(xc, axis=1) * (1.0 / c)                                         # (B, HW)
    pooled = jnp.concatenate([maxp, avgp], axis=1)                                 # (B, 2*HW)

    # Exact Conv2d(2, 1, 7, padding=3): pooled @ [m_max^T ; m_avg^T]  -> (B, HW)
    z = jnp.dot(pooled, mcat_ref[...], preferred_element_type=jnp.float32) + bs_ref[0, 0]
    sa = _sigmoid(z)                                                               # (B, HW)

    o_ref[...] = xc * sa[:, None, :]                 # lane-dense (B, C, HW) store


# ----------------------------- wrapper -----------------------------
def _pick_block_b(n, max_b=8, min_steps=4):
    """Largest divisor of n <= max_b that still leaves >= min_steps grid steps
    (keeps both v7x TensorCores fed with >= 2 iterations each when n allows)."""
    best = 1
    for b in range(1, min(n, max_b) + 1):
        if n % b == 0 and (n // b) >= min(min_steps, n):
            best = b
    return best


def cbam_forward(x_nchw, params):
    N, C, H, W = x_nchw.shape
    HW = H * W
    cr = params["w1"].shape[1]
    bb = _pick_block_b(N)

    x = x_nchw.reshape(N, C, HW).astype(jnp.float32)     # free contiguous reshape, no transpose

    out = pl.pallas_call(
        cbam_kernel,
        out_shape=jax.ShapeDtypeStruct((N, C, HW), jnp.float32),
        grid=(N // bb,),
        in_specs=[
            pl.BlockSpec((bb, C, HW), lambda n: (n, 0, 0)),          # x (NCHW block)
            pl.BlockSpec((C, cr), lambda n: (0, 0)),                 # channel MLP w1
            pl.BlockSpec((1, cr), lambda n: (0, 0)),                 # channel MLP b1
            pl.BlockSpec((cr, C), lambda n: (0, 0)),                 # channel MLP w2
            pl.BlockSpec((1, C), lambda n: (0, 0)),                  # channel MLP b2
            pl.BlockSpec((2 * HW, HW), lambda n: (0, 0)),            # fused spatial conv bands
            pl.BlockSpec(memory_space=pltpu.MemorySpace.SMEM),       # spatial conv bias (scalar)
        ],
        out_specs=pl.BlockSpec((bb, C, HW), lambda n: (n, 0, 0)),
        compiler_params=pltpu.CompilerParams(dimension_semantics=("parallel",)),
    )(x, params["w1"], params["b1"], params["w2"], params["b2"],
      params["mcat"], params["bs"])

    return out.reshape(N, C, H, W)                        # free reshape back to NCHW


# ----------------------------- host-side weight prep -----------------------------
def spatial_conv_matrix(H, W, w7):
    """Fused, pre-transposed band matrices realizing Conv2d(2, 1, 7, padding=3) as
    z = [max_pool, avg_pool] @ mcat, with mcat of shape (2*HW, HW).

    w7: numpy (2, 7, 7); channel 0 multiplies the max-pooled map, channel 1 the
    avg-pooled map (matching torch.cat([max_pool, avg_pool], dim=1)).
    """
    HW = H * W
    m = np.zeros((2, HW, HW), np.float32)
    for h in range(H):
        for w in range(W):
            r = h * W + w
            for di in range(-3, 4):
                hh = h + di
                if hh < 0 or hh >= H:
                    continue
                for dj in range(-3, 4):
                    ww = w + dj
                    if ww < 0 or ww >= W:
                        continue
                    q = hh * W + ww
                    m[0, r, q] = w7[0, di + 3, dj + 3]
                    m[1, r, q] = w7[1, di + 3, dj + 3]
    mcat = np.concatenate([m[0].T, m[1].T], axis=0)        # (2*HW, HW)
    return jnp.asarray(mcat)


def init_params(key, channels=64, reduction=16, H=16, W=16):
    cr = channels // reduction
    k = jax.random.split(key, 6)

    def nrm(kk, shape, scale):
        return jax.random.normal(kk, shape, jnp.float32) * scale

    w1 = nrm(k[0], (channels, cr), 1.0 / np.sqrt(channels))
    b1 = nrm(k[1], (1, cr), 0.01)
    w2 = nrm(k[2], (cr, channels), 1.0 / np.sqrt(cr))
    b2 = nrm(k[3], (1, channels), 0.01)
    w7 = nrm(k[4], (2, 7, 7), 1.0 / np.sqrt(2 * 49))
    bs = nrm(k[5], (1, 1), 0.01)
    mcat = spatial_conv_matrix(H, W, np.asarray(w7))
    return dict(w1=w1, b1=b1, w2=w2, b2=b2, w7=w7, bs=bs, mcat=mcat)


# ----------------------------- pure-JAX reference (for verification) -----------------------------
def _mish_ref(x):
    return x * jnp.tanh(jax.nn.softplus(x))


def cbam_reference(x, params):
    avg = jnp.mean(x, axis=(2, 3))                                             # (N, C)
    h = _mish_ref(jnp.dot(avg, params["w1"]) + params["b1"])
    c = jax.nn.sigmoid(jnp.dot(h, params["w2"]) + params["b2"])
    xc = x * c[:, :, None, None]
    maxp = jnp.max(xc, axis=1, keepdims=True)
    avgp = jnp.mean(xc, axis=1, keepdims=True)
    pooled = jnp.concatenate([maxp, avgp], axis=1)                             # (N, 2, H, W)
    z = jax.lax.conv_general_dilated(
        pooled, params["w7"][None], (1, 1), ((3, 3), (3, 3)),
        dimension_numbers=("NCHW", "OIHW", "NCHW")) + params["bs"][0, 0]
    return xc * jax.nn.sigmoid(z)


if __name__ == "__main__":
    key = jax.random.PRNGKey(0)
    pkey, xkey = jax.random.split(key)
    N, C, H, W = 2, 64, 16, 16                     # channels=64 with reduction=16 -> hidden=4
    params = init_params(pkey, channels=C, reduction=16, H=H, W=W)
    x = jax.random.normal(xkey, (N, C, H, W), jnp.float32)

    out = jax.jit(cbam_forward)(x, params)
    jax.block_until_ready(out)
    assert out.shape == (N, C, H, W) and out.dtype == jnp.float32

    ref = cbam_reference(x, params)
    err = float(jnp.max(jnp.abs(out - ref)))
    assert err < 2e-2, f"max abs error vs reference: {err}"
    print("KERNEL_OK")
</pallas_src>

<mosaic_0001>
module attributes {stable_mosaic.version = 11 : i64} {
  func.func @cbam_kernel(%arg0: i32, %arg1: memref<1x64x256xf32, #tpu.memory_space<vmem>>, %arg2: memref<64x4xf32, #tpu.memory_space<vmem>>, %arg3: memref<1x4xf32, #tpu.memory_space<vmem>>, %arg4: memref<4x64xf32, #tpu.memory_space<vmem>>, %arg5: memref<1x64xf32, #tpu.memory_space<vmem>>, %arg6: memref<512x256xf32, #tpu.memory_space<vmem>>, %arg7: memref<1x1xf32, #tpu.memory_space<smem>>, %arg8: memref<1x64x256xf32, #tpu.memory_space<vmem>>) attributes {dimension_semantics = [#tpu.dimension_semantics<parallel>], iteration_bounds = array<i64: 2>, scalar_prefetch = 0 : i64, scratch_operands = 0 : i64, tpu.core_type = #tpu.core_type<tc>, window_params = [{transform_indices = @transform_0, window_bounds = array<i64: 1, 64, 256>}, {pipeline_mode = #tpu.pipeline_mode<synchronous>, transform_indices = @transform_1, window_bounds = array<i64: 64, 4>}, {pipeline_mode = #tpu.pipeline_mode<synchronous>, transform_indices = @transform_2, window_bounds = array<i64: 1, 4>}, {pipeline_mode = #tpu.pipeline_mode<synchronous>, transform_indices = @transform_3, window_bounds = array<i64: 4, 64>}, {pipeline_mode = #tpu.pipeline_mode<synchronous>, transform_indices = @transform_4, window_bounds = array<i64: 1, 64>}, {pipeline_mode = #tpu.pipeline_mode<synchronous>, transform_indices = @transform_5, window_bounds = array<i64: 512, 256>}, {transform_indices = @transform_6, window_bounds = array<i64: 1, 1>}, {transform_indices = @transform_7, window_bounds = array<i64: 1, 64, 256>}]} {
    %c0 = arith.constant 0 : index
    %c0_0 = arith.constant 0 : index
    %c0_1 = arith.constant 0 : index
    %0 = vector.load %arg1[%c0, %c0_0, %c0_1] : memref<1x64x256xf32, #tpu.memory_space<vmem>>, vector<1x64x256xf32>
    %cst = arith.constant dense<0.000000e+00> : vector<1x64xf32>
    %1 = vector.multi_reduction <add>, %0, %cst [2] : vector<1x64x256xf32> to vector<1x64xf32>
    %cst_2 = arith.constant 3.906250e-03 : f32
    %2 = vector.broadcast %cst_2 : f32 to vector<1x64xf32>
    %3 = arith.mulf %1, %2 : vector<1x64xf32>
    %c0_3 = arith.constant 0 : index
    %c0_4 = arith.constant 0 : index
    %4 = vector.load %arg2[%c0_3, %c0_4] : memref<64x4xf32, #tpu.memory_space<vmem>>, vector<64x4xf32>
    %cst_5 = arith.constant dense<0.000000e+00> : vector<1x4xf32>
    %5 = tpu.matmul %3, %4, %cst_5 {dimension_numbers = #tpu.dot_dimension_numbers<[1], [0], [0], [1], [0, 0, 1, 1], [], []>} : vector<1x64xf32>, vector<64x4xf32>, vector<1x4xf32> -> vector<1x4xf32>
    %c0_6 = arith.constant 0 : index
    %c0_7 = arith.constant 0 : index
    %6 = vector.load %arg3[%c0_6, %c0_7] : memref<1x4xf32, #tpu.memory_space<vmem>>, vector<1x4xf32>
    %7 = arith.addf %5, %6 : vector<1x4xf32>
    %cst_8 = arith.constant 2.000000e+01 : f32
    %8 = vector.broadcast %cst_8 : f32 to vector<1x4xf32>
    %9 = arith.minimumf %7, %8 : vector<1x4xf32>
    %10 = math.exp %9 : vector<1x4xf32>
    %cst_9 = arith.constant 1.000000e+00 : f32
    %11 = vector.broadcast %cst_9 : f32 to vector<1x4xf32>
    %12 = arith.addf %11, %10 : vector<1x4xf32>
    %cst_10 = arith.constant 1.000000e+00 : f32
    %13 = vector.broadcast %cst_10 : f32 to vector<1x4xf32>
    %14 = arith.addf %13, %10 : vector<1x4xf32>
    %15 = arith.mulf %12, %14 : vector<1x4xf32>
    %cst_11 = arith.constant 2.000000e+01 : f32
    %16 = vector.broadcast %cst_11 : f32 to vector<1x4xf32>
    %17 = arith.cmpf ogt, %7, %16 : vector<1x4xf32>
    %cst_12 = arith.constant 1.000000e+00 : f32
    %18 = vector.broadcast %cst_12 : f32 to vector<1x4xf32>
    %19 = arith.subf %15, %18 : vector<1x4xf32>
    %20 = arith.mulf %7, %19 : vector<1x4xf32>
    %cst_13 = arith.constant 1.000000e+00 : f32
    %21 = vector.broadcast %cst_13 : f32 to vector<1x4xf32>
    %22 = arith.addf %15, %21 : vector<1x4xf32>
    %23 = tpu.reciprocal %22 {approx = true} : vector<1x4xf32> -> vector<1x4xf32>
    %24 = arith.mulf %20, %23 : vector<1x4xf32>
    %25 = arith.select %17, %7, %24 : vector<1x4xi1>, vector<1x4xf32>
    %c0_14 = arith.constant 0 : index
    %c0_15 = arith.constant 0 : index
    %26 = vector.load %arg4[%c0_14, %c0_15] : memref<4x64xf32, #tpu.memory_space<vmem>>, vector<4x64xf32>
    %cst_16 = arith.constant dense<0.000000e+00> : vector<1x64xf32>
    %27 = tpu.matmul %25, %26, %cst_16 {dimension_numbers = #tpu.dot_dimension_numbers<[1], [0], [0], [1], [0, 0, 1, 1], [], []>} : vector<1x4xf32>, vector<4x64xf32>, vector<1x64xf32> -> vector<1x64xf32>
    %c0_17 = arith.constant 0 : index
    %c0_18 = arith.constant 0 : index
    %28 = vector.load %arg5[%c0_17, %c0_18] : memref<1x64xf32, #tpu.memory_space<vmem>>, vector<1x64xf32>
    %29 = arith.addf %27, %28 : vector<1x64xf32>
    %cst_19 = arith.constant 0.000000e+00 : f32
    %30 = vector.broadcast %cst_19 : f32 to vector<1x64xf32>
    %31 = arith.subf %30, %29 : vector<1x64xf32>
    %cst_20 = arith.constant -6.000000e+01 : f32
    %cst_21 = arith.constant 6.000000e+01 : f32
    %32 = vector.broadcast %cst_20 : f32 to vector<1x64xf32>
    %33 = arith.maximumf %32, %31 : vector<1x64xf32>
    %34 = vector.broadcast %cst_21 : f32 to vector<1x64xf32>
    %35 = arith.minimumf %34, %33 : vector<1x64xf32>
    %36 = math.exp %35 : vector<1x64xf32>
    %cst_22 = arith.constant 1.000000e+00 : f32
    %37 = vector.broadcast %cst_22 : f32 to vector<1x64xf32>
    %38 = arith.addf %37, %36 : vector<1x64xf32>
    %39 = tpu.reciprocal %38 {approx = true} : vector<1x64xf32> -> vector<1x64xf32>
    %40 = vector.shape_cast %39 : vector<1x64xf32> to vector<1x64x1xf32>
    %41 = vector.broadcast %40 : vector<1x64x1xf32> to vector<1x64x256xf32>
    %42 = arith.mulf %0, %41 : vector<1x64x256xf32>
    %cst_23 = arith.constant dense<0xFF800000> : vector<1x256xf32>
    %43 = vector.multi_reduction <maximumf>, %42, %cst_23 [1] : vector<1x64x256xf32> to vector<1x256xf32>
    %cst_24 = arith.constant dense<0.000000e+00> : vector<1x256xf32>
    %44 = vector.multi_reduction <add>, %42, %cst_24 [1] : vector<1x64x256xf32> to vector<1x256xf32>
    %cst_25 = arith.constant 1.562500e-02 : f32
    %45 = vector.broadcast %cst_25 : f32 to vector<1x256xf32>
    %46 = arith.mulf %44, %45 : vector<1x256xf32>
    %47 = tpu.concatenate %43, %46 in 1 : vector<1x256xf32>, vector<1x256xf32> -> vector<1x512xf32>
    %c0_26 = arith.constant 0 : index
    %c0_27 = arith.constant 0 : index
    %48 = vector.load %arg6[%c0_26, %c0_27] : memref<512x256xf32, #tpu.memory_space<vmem>>, vector<512x256xf32>
    %cst_28 = arith.constant dense<0.000000e+00> : vector<1x256xf32>
    %49 = tpu.matmul %47, %48, %cst_28 {dimension_numbers = #tpu.dot_dimension_numbers<[1], [0], [0], [1], [0, 0, 1, 1], [], []>} : vector<1x512xf32>, vector<512x256xf32>, vector<1x256xf32> -> vector<1x256xf32>
    %c0_29 = arith.constant 0 : index
    %c0_30 = arith.constant 0 : index
    %50 = memref.load %arg7[%c0_29, %c0_30] : memref<1x1xf32, #tpu.memory_space<smem>>
    %51 = vector.broadcast %50 : f32 to vector<1x256xf32>
    %52 = arith.addf %49, %51 : vector<1x256xf32>
    %cst_31 = arith.constant 0.000000e+00 : f32
    %53 = vector.broadcast %cst_31 : f32 to vector<1x256xf32>
    %54 = arith.subf %53, %52 : vector<1x256xf32>
    %cst_32 = arith.constant -6.000000e+01 : f32
    %cst_33 = arith.constant 6.000000e+01 : f32
    %55 = vector.broadcast %cst_32 : f32 to vector<1x256xf32>
    %56 = arith.maximumf %55, %54 : vector<1x256xf32>
    %57 = vector.broadcast %cst_33 : f32 to vector<1x256xf32>
    %58 = arith.minimumf %57, %56 : vector<1x256xf32>
    %59 = math.exp %58 : vector<1x256xf32>
    %cst_34 = arith.constant 1.000000e+00 : f32
    %60 = vector.broadcast %cst_34 : f32 to vector<1x256xf32>
    %61 = arith.addf %60, %59 : vector<1x256xf32>
    %62 = tpu.reciprocal %61 {approx = true} : vector<1x256xf32> -> vector<1x256xf32>
    %63 = vector.shape_cast %62 : vector<1x256xf32> to vector<1x1x256xf32>
    %64 = vector.broadcast %63 : vector<1x1x256xf32> to vector<1x64x256xf32>
    %65 = arith.mulf %42, %64 : vector<1x64x256xf32>
    %c0_35 = arith.constant 0 : index
    %c0_36 = arith.constant 0 : index
    %c0_37 = arith.constant 0 : index
    %66 = vector.load %arg8[%c0_35, %c0_36, %c0_37] : memref<1x64x256xf32, #tpu.memory_space<vmem>>, vector<1x64x256xf32>
    tpu.vector_store %arg8[%c0_35, %c0_36, %c0_37], %65 {strides = array<i32>} : memref<1x64x256xf32, #tpu.memory_space<vmem>>, vector<1x64x256xf32>,
    return
  }
  func.func @transform_0(%arg0: i32) -> (i32, i32, i32) {
    %c0_i32 = arith.constant 0 : i32
    %c0_i32_0 = arith.constant 0 : i32
    %c0_i32_1 = arith.constant 0 : i32
    return %arg0, %c0_i32, %c0_i32_0 : i32, i32, i32
  }
  func.func @transform_1(%arg0: i32) -> (i32, i32) {
    %c0_i32 = arith.constant 0 : i32
    %c0_i32_0 = arith.constant 0 : i32
    %c0_i32_1 = arith.constant 0 : i32
    return %c0_i32, %c0_i32_0 : i32, i32
  }
  func.func @transform_2(%arg0: i32) -> (i32, i32) {
    %c0_i32 = arith.constant 0 : i32
    %c0_i32_0 = arith.constant 0 : i32
    %c0_i32_1 = arith.constant 0 : i32
    return %c0_i32, %c0_i32_0 : i32, i32
  }
  func.func @transform_3(%arg0: i32) -> (i32, i32) {
    %c0_i32 = arith.constant 0 : i32
    %c0_i32_0 = arith.constant 0 : i32
    %c0_i32_1 = arith.constant 0 : i32
    return %c0_i32, %c0_i32_0 : i32, i32
  }
  func.func @transform_4(%arg0: i32) -> (i32, i32) {
    %c0_i32 = arith.constant 0 : i32
    %c0_i32_0 = arith.constant 0 : i32
    %c0_i32_1 = arith.constant 0 : i32
    return %c0_i32, %c0_i32_0 : i32, i32
  }
  func.func @transform_5(%arg0: i32) -> (i32, i32) {
    %c0_i32 = arith.constant 0 : i32
    %c0_i32_0 = arith.constant 0 : i32
    %c0_i32_1 = arith.constant 0 : i32
    return %c0_i32, %c0_i32_0 : i32, i32
  }
  func.func @transform_6(%arg0: i32) -> (i32, i32) {
    %c0_i32 = arith.constant 0 : i32
    %c0_i32_0 = arith.constant 0 : i32
    %c0_i32_1 = arith.constant 0 : i32
    return %c0_i32, %c0_i32_0 : i32, i32
  }
  func.func @transform_7(%arg0: i32) -> (i32, i32, i32) {
    %c0_i32 = arith.constant 0 : i32
    %c0_i32_0 = arith.constant 0 : i32
    %c0_i32_1 = arith.constant 0 : i32
    return %arg0, %c0_i32, %c0_i32_0 : i32, i32, i32
  }
}

</mosaic_0001>

<bundles_post_ra>
// kernel: cbam_forward.1
= control target key start
LH: loop header
LB: loop body
LE: loop exit
PB: predicated region body
PF: predicated region fallthrough
CT: control target
= control target key end

     0   :  { %s1700_s0 = inlined_call_operand.vmem [shape: f32[2,64,256], index: 0, kind: input, shape index: {}]   ;;  %s1701_s1 = inlined_call_operand.vmem [shape: f32[64,4], index: 1, kind: input, shape index: {}]   ;;  %s1702_s2 = inlined_call_operand.vmem [shape: f32[1,4], index: 2, kind: input, shape index: {}]   ;;  %s1703_s3 = inlined_call_operand.vmem [shape: f32[4,64], index: 3, kind: input, shape index: {}]   ;;  %s1704_s4 = inlined_call_operand.vmem [shape: f32[1,64], index: 4, kind: input, shape index: {}]   ;;  %s1705_s5 = inlined_call_operand.hbm [shape: f32[512,256], index: 5, kind: input, shape index: {}]   ;;  %s1706_s6 = inlined_call_operand.<no memory space> [shape: f32[1,1], index: 6, kind: input, shape index: {}]   ;;  %s1707_s7 = inlined_call_operand.vmem [shape: f32[2,64,256], index: 7, kind: output, shape index: {}]  }
   0x1   :  { %12 = sst [smem:[#allocation2]] %s1706_s6 }
   0x2   :  { %13 = vsyncpa [#allocation4], 0  ;;  %s1415_s26 = smov 0  }
   0x3 LB: > { %s1421_s27 = sadd.s32 4294967295, %s1364_s26   ;;  %p1087_p0 = scmp.ge.s32.totalorder %s1364_s26, 1  ;;  %s1364_s26 = sphi %s1415_s26, %s19_s26  }
   0x4   : > { %p202_p1 = scmp.lt.s32.totalorder %s1364_s26, 3  ;;  %s1366_s28 = smov [#allocation3]  }
   0x5   : > { %s226_s29 = sshll.u32 %s1366_s28, 4  ;;  %p1708_p3 = scmp.eq.s32.totalorder %s1421_s27, 0  ;;  %s227_s29 = int_to_ptr.vmem [resolvable:$true] %s226_s29 }
   0x6   : > { %p1425_p2 = pnand %p1087_p0, %p202_p1  ;;  %s1326_s10 = scalar_lea.hbm %s1705_s5, 16384 }
   0x7   : > { %p1327_p6 = scmp.ne.s32.totalorder %s1705_s5, %s1326_s10  ;;  %p1333_p10 = scmp.lt.u32.totalorder %s1326_s10, %s1705_s5 }
   0x8   : > { %s1710_s6 = scalar_select %p1425_p2, 1, 0 }
   0x9   : > { %p1290_p4 = pneg %p1425_p2 }
   0xb   : > { %p1434_p5 = pnand %p1708_p3, %p1290_p4 }
   0xd   : > { %p1328_p7 = pneg %p1434_p5 }
   0xf   : > { %p1329_p8 = pnand %p1328_p7, %p1327_p6 }
  0x11   : > { %p1330_p9 = pneg %p1329_p8 }
  0x13   : > { %p1335_p11 = pnand %p1333_p10, %p1330_p9 }
  0x15   : > { %1338 = shalt.err (!%p1335_p11)
}
  0x16   : > { %s1339_s15 = scalar_lea.vmem %s227_s29, 16384  ;;  %p1347_p1 = scmp.lt.s32.totalorder %s227_s29, %s227_s29 }
  0x17   : > { %p1340_p12 = scmp.ne.s32.totalorder %s227_s29, %s1339_s15  ;;  %p1348_p4 = scmp.lt.s32.totalorder %s1339_s15, %s1339_s15 }
  0x19   : > { %p1342_p13 = pnand %p1340_p12, %p1328_p7  ;;  %p1349_p3 = por %p1348_p4, %p1347_p1 }
  0x1b   : > { %p1343_p0 = pneg %p1342_p13 }
  0x1d   : > { %p1350_p2 = pnand %p1349_p3, %p1343_p0 }
  0x1f   : > { %1353 = shalt.err (!%p1350_p2)
}
  0x20   : > { %s1367_s16 = smov 256   ;;  %s1368_s17 = smov 16  }
  0x21   : > { %1293 = dma.hbm_to_vmem [thread:$0]  (!%p1434_p5), %s1705_s5, 16384, %s227_s29, [#allocation4], %s1367_s16, %s1367_s16, %s1368_s17  }
  0x22   : > { %p1712_p6 = scmp.ne.s32.totalorder %s1710_s6, 0 }
  0x23   : > { %p1713_p8 = scmp.eq.s32.totalorder (!%p1712_p6), %s1421_s27, 0 }
  0x24   : > { %253 = sbr.rel (%p1712_p6) target bundleno = 1115 (0x45b), region = 48 }
  0x2b   : > { %1359 = dma.done.wait (%p1713_p8), [#allocation4], 16384   ;;  %p1714_p7 = pmov %p1713_p8 }
  0x2c   : > { %p285_p2 = scmp.lt.s32.totalorder %s1421_s27, 1  ;;  %v343_v24 = vld [vmem:[%s1701_s1] sm:$0xff]  ;;  %v344_v25 = vld [vmem:[%s1701_s1 + $0x8] sm:$0xff]  ;;  %v1369_v27 = vmov 0.0|0.0   ;;  %v345_v28 = vld [vmem:[%s1701_s1 + $0x10] sm:$0xff]  ;;  %vm1370_vm0 = vmmov 0   ;;  %v360_v38 = vlaneseq }
  0x2d   : > { %1361 = vsyncadd (%p1714_p7), [#allocation4], 4294950912  ;;  %v1143_v26 = vpack.c.bf16 %v344_v25, %v343_v24  ;;  %1142 = vmatprep.subr.bf16.mxu0 %v1369_v27  ;;  %v346_v29 = vld [vmem:[%s1701_s1 + $0x18] sm:$0xff]  ;;  %v347_v31 = vld [vmem:[%s1701_s1 + $0x20] sm:$0xff]  ;;  %v1371_v37 = vmov 0.0   ;;  %vm371_vm1 = vcmask 130112  }
  0x2e   : > { %s1716_s27 = smov (!%p285_p2, %s1421_s27), 1  ;;  %v1146_v30 = vpack.c.bf16 %v346_v29, %v345_v28  ;;  %v348_v32 = vld [vmem:[%s1701_s1 + $0x28] sm:$0xff]  ;;  %v349_v34 = vld [vmem:[%s1701_s1 + $0x30] sm:$0xff]  ;;  %v350_v35 = vld [vmem:[%s1701_s1 + $0x38] sm:$0xff]  ;;  %1134 = vmatprep.mubr.msk.f32.mxu0 %vm1370_vm0, %v1371_v37  ;;  %1137 = vmatprep.subr.mxu1 %v1371_v37  ;;  %v361_v39 = vand.u32 127, %v360_v38  ;;  %v1542_v40 = vshrl.u32 %v360_v38, 7 }
  0x2f   : > { %s1105_s20 = sshll.u32 %s1716_s27, 7  ;;  %1144 = vmatpush3.bf16.msra.mxu0 %v1143_v26  ;;  %v1149_v33 = vpack.c.bf16 %v348_v32, %v347_v31  ;;  %v1152_v36 = vpack.c.bf16 %v350_v35, %v349_v34  ;;  %1139 = vmatprep.mubr.msk.f32.mxu1 %vm1370_vm0, %v1371_v37  ;;  %vm378_vm2 = vcmask 195712   ;;  %vm385_vm3 = vcmask 261312   ;;  %s820_s25 = sld [smem:[#allocation2]] }
  0x30   : > { %s289_s23 = scalar_lea.vmem %s1700_s0, %s1105_s20  ;;  %1145 = vmatprep.subr.bf16.mxu0 %v1369_v27  ;;  %v366_v41 = vadd.s32 4294967288, %v361_v39  ;;  %v373_v43 = vadd.s32 4294967280, %v361_v39  ;;  %v380_v44 = vadd.s32 4294967272, %v361_v39  ;;  %v364_v46 = vsub.s32 %v361_v39, %v1542_v40  ;;  %s1662_s6 = scalar_lea.vmem %s1707_s7, %s1105_s20 }
  0x31   : > { %v1470_v0 = vld [vmem:[%s289_s23] sm:$0xff]  ;;  %v1472_v1 = vld [vmem:[%s289_s23 + $0x8] sm:$0xff]  ;;  %v1480_v5 = vld [vmem:[%s289_s23 + $0x10] sm:$0xff]  ;;  %v387_v49 = vadd.s32 4294967264, %v361_v39  ;;  %v394_v54 = vadd.s32 4294967256, %v361_v39  ;;  %v401_v61 = vadd.s32 4294967248, %v361_v39 }
  0x32   : > { %v1474_v2 = vld [vmem:[%s289_s23 + $0x20] sm:$0xff]  ;;  %v311_v3 = vadd.f32 %v1472_v1, %v1470_v0  ;;  %v1478_v4 = vld [vmem:[%s289_s23 + $0x28] sm:$0xff]  ;;  %v1482_v6 = vld [vmem:[%s289_s23 + $0x18] sm:$0xff]  ;;  %v369_v48 = vsub.s32 %v366_v41, %v1542_v40  ;;  %v376_v50 = vsub.s32 %v373_v43, %v1542_v40  ;;  %v383_v53 = vsub.s32 %v380_v44, %v1542_v40 }
  0x33   : > { %v317_v7 = vadd.f32 %v1478_v4, %v1474_v2  ;;  %v1486_v8 = vld [vmem:[%s289_s23 + $0x30] sm:$0xff]  ;;  %v1488_v9 = vld [vmem:[%s289_s23 + $0x38] sm:$0xff]  ;;  %v314_v10 = vadd.f32 %v1482_v6, %v1480_v5  ;;  %v1494_v12 = vld [vmem:[%s289_s23 + $0x40] sm:$0xff]  ;;  %1147 = vmatpush3.bf16.msra.mxu0 %v1146_v30  ;;  %v390_v60 = vsub.s32 %v387_v49, %v1542_v40  ;;  %vm392_vm4 = vcmask 326912  }
  0x34   : > { %312 = vadd.xlane.f32.xlu0 %v311_v3  ;;  %v320_v11 = vadd.f32 %v1488_v9, %v1486_v8  ;;  %v1496_v13 = vld [vmem:[%s289_s23 + $0x48] sm:$0xff]  ;;  %v1498_v14 = vld [vmem:[%s289_s23 + $0x50] sm:$0xff]  ;;  %v1500_v15 = vld [vmem:[%s289_s23 + $0x58] sm:$0xff]  ;;  %1148 = vmatprep.subr.bf16.mxu0 %v1369_v27  ;;  %v404_v26 = vsub.s32 %v401_v61, %v1542_v40  ;;  %vm399_vm5 = vcmask 392512   ;;  %vm406_vm6 = vcmask 458112  }
  0x35   : > { %318 = vadd.xlane.f32.xlu1 %v317_v7  ;;  %v323_v16 = vadd.f32 %v1496_v13, %v1494_v12  ;;  %v326_v17 = vadd.f32 %v1500_v15, %v1498_v14  ;;  %v1506_v18 = vld [vmem:[%s289_s23 + $0x60] sm:$0xff]  ;;  %v1508_v19 = vld [vmem:[%s289_s23 + $0x68] sm:$0xff]  ;;  %v1510_v20 = vld [vmem:[%s289_s23 + $0x70] sm:$0xff]  ;;  %v397_v7 = vsub.s32 %v394_v54, %v1542_v40  ;;  %vm413_vm7 = vcmask 523712  }
  0x36   : > { %v1512_v21 = vld [vmem:[%s289_s23 + $0x78] sm:$0xff]  ;;  %v329_v22 = vadd.f32 %v1508_v19, %v1506_v18  ;;  %vm415_vm8 = vcmask 523264   ;;  %vm506_vm9 = vcmask 1043456   ;;  %v351_v41 = vld [vmem:[%s1702_s2] sm:$0x1]  ;;  %vm502_vm10 = vcmask 31744  }
  0x37   : > { %v332_v23 = vadd.f32 %v1512_v21, %v1510_v20  ;;  %1150 = vmatpush3.bf16.msra.mxu0 %v1149_v33  ;;  %v692_v61 = vld [vmem:[#allocation3] sm:$0xff] }
  0x38   : > { %315 = vadd.xlane.f32.xlu0 %v314_v10  ;;  %1151 = vmatprep.subr.bf16.mxu0 %v1369_v27  ;;  %v408_v10 = vadd.s32 4294967240, %v361_v39  ;;  %v500_v39 = vld [vmem:[%s1703_s3] sm:$0xf] }
  0x39   : > { %321 = vadd.xlane.f32.xlu1 %v320_v11  ;;  %1138 = vmatpush3.msk.msra.mxu1 %vm506_vm9, %v500_v39  ;;  %v702_v39 = vld [vmem:[#allocation3 + $0x50] sm:$0xff] }
  0x3a   : > { %v411_v29 = vsub.s32 %v408_v10, %v1542_v40  ;;  %v758_v10 = vld [vmem:[#allocation3 + $0x210] sm:$0xff] }
  0x3b   : > { %1153 = vmatpush3.bf16.msra.mxu0 %v1152_v36 }
  0x3c   : > { %324 = vadd.xlane.f32.xlu0 %v323_v16 }
  0x3d   : > { %327 = vadd.xlane.f32.xlu1 %v326_v17 }
  0x40   : > { %330 = vadd.xlane.f32.xlu0 %v329_v22 }
  0x41   : > { %333 = vadd.xlane.f32.xlu1 %v332_v23 }
  0xc1   : > { %v313_v42 = vpop.xlane.xlu0 %312 }
  0xc2   : > { %v319_v45 = vpop.xlane.xlu1 %318  ;;  %v335_v47 = vmul.f32 0.00390625, %v313_v42 }
  0xc3   : > { %v337_v51 = vmul.f32 0.00390625, %v319_v45 }
  0xc4   : > { %v365_v58 = vrot.slane %v335_v47, %v364_v46 }
  0xc5   : > { %v316_v52 = vpop.xlane.xlu0 %315  ;;  %v377_v62 = vrot.slane %v337_v51, %v376_v50 }
  0xc6   : > { %v336_v55 = vmul.f32 0.00390625, %v316_v52  ;;  %v322_v56 = vpop.xlane.xlu1 %321 }
  0xc7   : > { %v338_v57 = vmul.f32 0.00390625, %v322_v56  ;;  %v693_v56 = vld [vmem:[#allocation3 + $0x8] sm:$0xff] }
  0xc8   : > { %v370_v59 = vrot.slane %v336_v55, %v369_v48 }
  0xc9   : > { %v384_v63 = vrot.slane %v338_v57, %v383_v53  ;;  %v325_v3 = vpop.xlane.xlu0 %324  ;;  %v695_v57 = vld [vmem:[#allocation3 + $0x18] sm:$0xff] }
  0xca   : > { %v372_v11 = vsel %vm371_vm1, %v370_v59, %v365_v58  ;;  %v339_v16 = vmul.f32 0.00390625, %v325_v3  ;;  %v328_v17 = vpop.xlane.xlu1 %327  ;;  %v757_v58 = vld [vmem:[#allocation3 + $0x208] sm:$0xff]  ;;  %v1154_v59 = vpack.c.bf16 %v695_v57, %v693_v56  ;;  %v711_v56 = vld [vmem:[#allocation3 + $0x98] sm:$0xff] }
  0xcb   : > { %v379_v22 = vsel %vm378_vm2, %v377_v62, %v372_v11  ;;  %v340_v23 = vmul.f32 0.00390625, %v328_v17  ;;  %v694_v62 = vld [vmem:[#allocation3 + $0x10] sm:$0xff]  ;;  %v697_v11 = vld [vmem:[#allocation3 + $0x28] sm:$0xff]  ;;  %v699_v17 = vld [vmem:[#allocation3 + $0x38] sm:$0xff] }
  0xcc   : > { %v386_v24 = vsel %vm385_vm3, %v384_v63, %v379_v22  ;;  %v391_v25 = vrot.slane %v339_v16, %v390_v60  ;;  %v759_v60 = vld [vmem:[#allocation3 + $0x218] sm:$0xff]  ;;  %v1156_v3 = vpack.c.bf16 %v694_v62, %v692_v61  ;;  %1155 = vmatprep.subr.bf16.mxu0 %v1154_v59  ;;  %v761_v22 = vld [vmem:[#allocation3 + $0x228] sm:$0xff]  ;;  %v708_v62 = vld [vmem:[#allocation3 + $0x80] sm:$0xff] }
  0xcd   : > { %v398_v27 = vrot.slane %v340_v23, %v397_v7  ;;  %v331_v28 = vpop.xlane.xlu0 %330  ;;  %v1218_v63 = vpack.c.bf16 %v759_v60, %v757_v58  ;;  %v756_v7 = vld [vmem:[#allocation3 + $0x200] sm:$0xff]  ;;  %v763_v23 = vld [vmem:[#allocation3 + $0x238] sm:$0xff]  ;;  %v773_v57 = vld [vmem:[#allocation3 + $0x288] sm:$0xff] }
  0xce   : > { %v393_v30 = vsel %vm392_vm4, %v391_v25, %v386_v24  ;;  %v341_v31 = vmul.f32 0.00390625, %v331_v28  ;;  %v334_v32 = vpop.xlane.xlu1 %333  ;;  %v1220_v16 = vpack.c.bf16 %v758_v10, %v756_v7  ;;  %v1158_v24 = vpack.c.bf16 %v699_v17, %v697_v11  ;;  %v760_v28 = vld [vmem:[#allocation3 + $0x220] sm:$0xff]  ;;  %v775_v58 = vld [vmem:[#allocation3 + $0x298] sm:$0xff]  ;;  %v774_v10 = vld [vmem:[#allocation3 + $0x290] sm:$0xff] }
  0xcf   : > { %v342_v33 = vmul.f32 0.00390625, %v334_v32  ;;  %v400_v35 = vsel %vm399_vm5, %v398_v27, %v393_v30  ;;  %1219 = vmatprep.subr.bf16.mxu1 %v1218_v63  ;;  %v1222_v25 = vpack.c.bf16 %v763_v23, %v761_v22  ;;  %v698_v27 = vld [vmem:[#allocation3 + $0x30] sm:$0xff]  ;;  %v703_v32 = vld [vmem:[#allocation3 + $0x58] sm:$0xff]  ;;  %v1234_v7 = vpack.c.bf16 %v775_v58, %v773_v57  ;;  %v713_v11 = vld [vmem:[#allocation3 + $0xa8] sm:$0xff] }
  0xd0   : > { %v405_v34 = vrot.slane %v341_v31, %v404_v26  ;;  %v696_v26 = vld [vmem:[#allocation3 + $0x20] sm:$0xff]  ;;  %v762_v30 = vld [vmem:[#allocation3 + $0x230] sm:$0xff]  ;;  %v701_v31 = vld [vmem:[#allocation3 + $0x48] sm:$0xff] }
  0xd1   : > { %v412_v36 = vrot.slane %v342_v33, %v411_v29  ;;  %v1160_v29 = vpack.c.bf16 %v698_v27, %v696_v26  ;;  %v1224_v33 = vpack.c.bf16 %v762_v30, %v760_v28  ;;  %v710_v63 = vld [vmem:[#allocation3 + $0x90] sm:$0xff]  ;;  %v777_v17 = vld [vmem:[#allocation3 + $0x2a8] sm:$0xff]  ;;  %v779_v22 = vld [vmem:[#allocation3 + $0x2b8] sm:$0xff] }
  0xd2   : > { %v407_v37 = vsel %vm406_vm6, %v405_v34, %v400_v35  ;;  %v1162_v34 = vpack.c.bf16 %v703_v32, %v701_v31  ;;  %v765_v35 = vld [vmem:[#allocation3 + $0x248] sm:$0xff]  ;;  %v1172_v23 = vpack.c.bf16 %v710_v63, %v708_v62  ;;  %v712_v26 = vld [vmem:[#allocation3 + $0xa0] sm:$0xff]  ;;  %v714_v27 = vld [vmem:[#allocation3 + $0xb0] sm:$0xff] }
  0xd3   : > { %v414_v38 = vsel %vm413_vm7, %v412_v36, %v407_v37  ;;  %v767_v36 = vld [vmem:[#allocation3 + $0x258] sm:$0xff]  ;;  %v700_v37 = vld [vmem:[#allocation3 + $0x40] sm:$0xff]  ;;  %v778_v30 = vld [vmem:[#allocation3 + $0x2b0] sm:$0xff] }
  0xd4   : > { %1135 = vmatmul.mubr.msk.f32.vlgmr.msra.gmra.mrb[0].mxu0 %vm415_vm8, %v414_v38  ;;  %v1226_v38 = vpack.c.bf16 %v767_v36, %v765_v35  ;;  %v776_v28 = vld [vmem:[#allocation3 + $0x2a0] sm:$0xff]  ;;  %v717_v31 = vld [vmem:[#allocation3 + $0xc8] sm:$0xff]  ;;  %v719_v32 = vld [vmem:[#allocation3 + $0xd8] sm:$0xff]  ;;  %v1176_v35 = vpack.c.bf16 %v714_v27, %v712_v26 }
  0xd5   : > { %1157 = vmatpush1.bf16.msra.mxu0 %v1156_v3  ;;  %v772_v3 = vld [vmem:[#allocation3 + $0x280] sm:$0xff]  ;;  %v1240_v36 = vpack.c.bf16 %v778_v30, %v776_v28 }
  0xd6   : > { %1159 = vmatprep.subr.bf16.mxu0 %v1158_v24  ;;  %v1236_v24 = vpack.c.bf16 %v774_v10, %v772_v3  ;;  %v784_v62 = vld [vmem:[#allocation3 + $0x2e0] sm:$0xff] }
  0xd7   : > { %v788_v28 = vld [vmem:[#allocation3 + $0x300] sm:$0xff] }
  0xd9   : > { %1161 = vmatpush1.bf16.msra.mxu0 %v1160_v29  ;;  %v1238_v29 = vpack.c.bf16 %v779_v22, %v777_v17  ;;  %v789_v17 = vld [vmem:[#allocation3 + $0x308] sm:$0xff] }
  0xda   : > { %1163 = vmatprep.subr.bf16.mxu0 %v1162_v34  ;;  %v783_v34 = vld [vmem:[#allocation3 + $0x2d8] sm:$0xff] }
 0x1a7   : > { %v484_v42 = vpop.f32.mrb[0].mxu0 }
 0x1a8   : > { %v485_v43 = vadd.f32 %v484_v42, %v351_v41  ;;  %v1136_v44 = vpop.f32.mrb[1].mxu0  ;;  %v764_v41 = vld [vmem:[#allocation3 + $0x240] sm:$0xff]  ;;  %v766_v42 = vld [vmem:[#allocation3 + $0x250] sm:$0xff] }
 0x1a9   : > { %v705_v44 = vld [vmem:[#allocation3 + $0x68] sm:$0xff] }
 0x1aa   : > { %v488_v45 = vmin.f32 %v485_v43, 20.0  ;;  %vm493_vm11 = vcmp.gt.f32.partialorder %v485_v43, 20.0 }
 0x1ac   : > { %v489_v46 = vmul.f32 1.442695, %v488_v45  ;;  %v707_v45 = vld [vmem:[#allocation3 + $0x78] sm:$0xff] }
 0x1ae   : > { %1310 = vpow2.f32 %v489_v46  ;;  %v769_v46 = vld [vmem:[#allocation3 + $0x268] sm:$0xff] }
 0x1b8   : > { %v1311_v47 = vpop.eup %1310 }
 0x1b9   : > { %v491_v48 = vadd.f32 1.0, %v1311_v47  ;;  %v1228_v47 = vpack.c.bf16 %v766_v42, %v764_v41  ;;  %v780_v41 = vld [vmem:[#allocation3 + $0x2c0] sm:$0xff] }
 0x1bb   : > { %v492_v49 = vmul.f32 %v491_v48, %v491_v48  ;;  %v1166_v48 = vpack.c.bf16 %v707_v45, %v705_v44  ;;  %v721_v44 = vld [vmem:[#allocation3 + $0xe8] sm:$0xff]  ;;  %v723_v45 = vld [vmem:[#allocation3 + $0xf8] sm:$0xff] }
 0x1bd   : > { %v496_v50 = vadd.f32 1.0, %v492_v49  ;;  %v1097_v51 = vadd.f32 -1.0, %v492_v49  ;;  %v771_v49 = vld [vmem:[#allocation3 + $0x278] sm:$0xff] }
 0x1bf   : > { %1312 = vrcp.f32 %v496_v50  ;;  %v495_v52 = vmul.f32 %v1097_v51, %v485_v43  ;;  %v704_v50 = vld [vmem:[#allocation3 + $0x60] sm:$0xff]  ;;  %v706_v51 = vld [vmem:[#allocation3 + $0x70] sm:$0xff] }
 0x1c0   : > { %v1168_v59 = vpack.c.bf16 %v706_v51, %v704_v50  ;;  %v1182_v50 = vpack.c.bf16 %v723_v45, %v721_v44  ;;  %v733_v45 = vld [vmem:[#allocation3 + $0x148] sm:$0xff] }
 0x1c9   : > { %v1313_v53 = vpop.eup %1312 }
 0x1ca   : > { %v498_v54 = vmul.f32 %v1313_v53, %v495_v52  ;;  %v1230_v52 = vpack.c.bf16 %v771_v49, %v769_v46  ;;  %v768_v53 = vld [vmem:[#allocation3 + $0x260] sm:$0xff]  ;;  %v785_v46 = vld [vmem:[#allocation3 + $0x2e8] sm:$0xff] }
 0x1cc   : > { %v499_v55 = vsel %vm493_vm11, %v485_v43, %v498_v54  ;;  %v1164_v43 = vpack.c.bf16 %v702_v39, %v700_v37  ;;  %v770_v54 = vld [vmem:[#allocation3 + $0x270] sm:$0xff]  ;;  %v1178_v37 = vpack.c.bf16 %v719_v32, %v717_v31  ;;  %v729_v31 = vld [vmem:[#allocation3 + $0x128] sm:$0xff]  ;;  %v731_v32 = vld [vmem:[#allocation3 + $0x138] sm:$0xff] }
 0x1cd   : > { %1140 = vmatmul.mubr.msk.f32.vlgmr.msra.gmra.mrb[0].mxu1 %vm502_vm10, %v499_v55  ;;  %v709_v55 = vld [vmem:[#allocation3 + $0x88] sm:$0xff]  ;;  %v1232_v60 = vpack.c.bf16 %v770_v54, %v768_v53  ;;  %v718_v39 = vld [vmem:[#allocation3 + $0xd0] sm:$0xff] }
 0x1ce   : > { %1221 = vmatpush1.bf16.msra.mxu1 %v1220_v16  ;;  %1165 = vmatpush1.bf16.msra.mxu0 %v1164_v43  ;;  %v1170_v61 = vpack.c.bf16 %v711_v56, %v709_v55  ;;  %v715_v16 = vld [vmem:[#allocation3 + $0xb8] sm:$0xff]  ;;  %v782_v43 = vld [vmem:[#allocation3 + $0x2d0] sm:$0xff] }
 0x1cf   : > { %1223 = vmatprep.subr.bf16.mxu1 %v1222_v25  ;;  %1167 = vmatprep.subr.bf16.mxu0 %v1166_v48  ;;  %v1174_v25 = vpack.c.bf16 %v715_v16, %v713_v11  ;;  %v1244_v49 = vpack.c.bf16 %v782_v43, %v780_v41  ;;  %v725_v11 = vld [vmem:[#allocation3 + $0x108] sm:$0xff]  ;;  %v727_v16 = vld [vmem:[#allocation3 + $0x118] sm:$0xff]  ;;  %v1563_v41 = vsub.s32 0, %v1542_v40  ;;  %v794_v43 = vld [vmem:[#allocation3 + $0x330] sm:$0xff] }
 0x1d0   : > { %v1186_v22 = vpack.c.bf16 %v727_v16, %v725_v11  ;;  %v800_v11 = vld [vmem:[#allocation3 + $0x360] sm:$0xff]  ;;  %v802_v16 = vld [vmem:[#allocation3 + $0x370] sm:$0xff] }
 0x1d2   : > { %1225 = vmatpush1.bf16.msra.mxu1 %v1224_v33  ;;  %1169 = vmatpush1.bf16.msra.mxu0 %v1168_v59  ;;  %v781_v33 = vld [vmem:[#allocation3 + $0x2c8] sm:$0xff] }
 0x1d3   : > { %1227 = vmatprep.subr.bf16.mxu1 %v1226_v38  ;;  %1171 = vmatprep.subr.bf16.mxu0 %v1170_v61  ;;  %v716_v38 = vld [vmem:[#allocation3 + $0xc0] sm:$0xff]  ;;  %v1242_v42 = vpack.c.bf16 %v783_v34, %v781_v33  ;;  %v722_v61 = vld [vmem:[#allocation3 + $0xf0] sm:$0xff]  ;;  %v793_v33 = vld [vmem:[#allocation3 + $0x328] sm:$0xff]  ;;  %v1190_v34 = vpack.c.bf16 %v731_v32, %v729_v31 }
 0x1d4   : > { %v1180_v48 = vpack.c.bf16 %v718_v39, %v716_v38  ;;  %v730_v38 = vld [vmem:[#allocation3 + $0x130] sm:$0xff]  ;;  %v792_v39 = vld [vmem:[#allocation3 + $0x320] sm:$0xff] }
 0x1d5   : > { %v1256_v44 = vpack.c.bf16 %v794_v43, %v792_v39  ;;  %v804_v31 = vld [vmem:[#allocation3 + $0x380] sm:$0xff]  ;;  %v806_v32 = vld [vmem:[#allocation3 + $0x390] sm:$0xff] }
 0x1d6   : > { %1229 = vmatpush1.bf16.msra.mxu1 %v1228_v47  ;;  %1173 = vmatpush1.bf16.msra.mxu0 %v1172_v23  ;;  %v787_v47 = vld [vmem:[#allocation3 + $0x2f8] sm:$0xff]  ;;  %v744_v39 = vld [vmem:[#allocation3 + $0x1a0] sm:$0xff] }
 0x1d7   : > { %1231 = vmatprep.subr.bf16.mxu1 %v1230_v52  ;;  %1175 = vmatprep.subr.bf16.mxu0 %v1174_v25  ;;  %v1246_v51 = vpack.c.bf16 %v787_v47, %v785_v46  ;;  %v501_v52 = vld [vmem:[%s1704_s4] sm:$0x1]  ;;  %v791_v23 = vld [vmem:[#allocation3 + $0x318] sm:$0xff]  ;;  %v726_v25 = vld [vmem:[#allocation3 + $0x110] sm:$0xff] }
 0x1d8   : > { %v1250_v26 = vpack.c.bf16 %v791_v23, %v789_v17  ;;  %v735_v46 = vld [vmem:[#allocation3 + $0x158] sm:$0xff]  ;;  %v797_v47 = vld [vmem:[#allocation3 + $0x348] sm:$0xff]  ;;  %v1264_v17 = vpack.c.bf16 %v802_v16, %v800_v11  ;;  %v754_v11 = vld [vmem:[#allocation3 + $0x1f0] sm:$0xff] }
 0x1d9   : > { %v743_v23 = vld [vmem:[#allocation3 + $0x198] sm:$0xff]  ;;  %v816_v16 = vld [vmem:[#allocation3 + $0x3e0] sm:$0xff] }
 0x1da   : > { %1233 = vmatpush1.bf16.msra.mxu1 %v1232_v60  ;;  %1177 = vmatpush1.bf16.msra.mxu0 %v1176_v35  ;;  %v720_v60 = vld [vmem:[#allocation3 + $0xe0] sm:$0xff]  ;;  %v795_v35 = vld [vmem:[#allocation3 + $0x338] sm:$0xff] }
 0x1db   : > { %1235 = vmatprep.subr.bf16.mxu1 %v1234_v7  ;;  %1179 = vmatprep.subr.bf16.mxu0 %v1178_v37  ;;  %v1184_v3 = vpack.c.bf16 %v722_v61, %v720_v60  ;;  %v786_v7 = vld [vmem:[#allocation3 + $0x2f0] sm:$0xff]  ;;  %v728_v37 = vld [vmem:[#allocation3 + $0x120] sm:$0xff]  ;;  %v801_v60 = vld [vmem:[#allocation3 + $0x368] sm:$0xff] }
 0x1dc   : > { %v1248_v10 = vpack.c.bf16 %v786_v7, %v784_v62  ;;  %v803_v62 = vld [vmem:[#allocation3 + $0x378] sm:$0xff] }
 0x1dd   : > { %v1262_v7 = vpack.c.bf16 %v803_v62, %v801_v60  ;;  %v817_v62 = vld [vmem:[#allocation3 + $0x3e8] sm:$0xff] }
 0x1de   : > { %1237 = vmatpush1.bf16.msra.mxu1 %v1236_v24  ;;  %1181 = vmatpush1.bf16.msra.mxu0 %v1180_v48  ;;  %v724_v24 = vld [vmem:[#allocation3 + $0x100] sm:$0xff] }
 0x1df   : > { %1239 = vmatprep.subr.bf16.mxu1 %v1238_v29  ;;  %1183 = vmatprep.subr.bf16.mxu0 %v1182_v50  ;;  %v1188_v27 = vpack.c.bf16 %v726_v25, %v724_v24  ;;  %v790_v29 = vld [vmem:[#allocation3 + $0x310] sm:$0xff]  ;;  %v799_v50 = vld [vmem:[#allocation3 + $0x358] sm:$0xff]  ;;  %v805_v24 = vld [vmem:[#allocation3 + $0x388] sm:$0xff] }
 0x1e0   : > { %v1252_v30 = vpack.c.bf16 %v790_v29, %v788_v28  ;;  %v1258_v40 = vpack.c.bf16 %v799_v50, %v797_v47  ;;  %v742_v28 = vld [vmem:[#allocation3 + $0x190] sm:$0xff]  ;;  %v813_v50 = vld [vmem:[#allocation3 + $0x3c8] sm:$0xff] }
 0x1e2   : > { %1241 = vmatpush1.bf16.msra.mxu1 %v1240_v36  ;;  %1185 = vmatpush1.bf16.msra.mxu0 %v1184_v3  ;;  %v1254_v36 = vpack.c.bf16 %v795_v35, %v793_v33  ;;  %v738_v3 = vld [vmem:[#allocation3 + $0x170] sm:$0xff]  ;;  %v1268_v33 = vpack.c.bf16 %v806_v32, %v804_v31  ;;  %v747_v35 = vld [vmem:[#allocation3 + $0x1b8] sm:$0xff] }
 0x1e3   : > { %1243 = vmatprep.subr.bf16.mxu1 %v1242_v42  ;;  %1187 = vmatprep.subr.bf16.mxu0 %v1186_v22  ;;  %v1192_v42 = vpack.c.bf16 %v730_v38, %v728_v37  ;;  %v741_v22 = vld [vmem:[#allocation3 + $0x188] sm:$0xff]  ;;  %v811_v38 = vld [vmem:[#allocation3 + $0x3b8] sm:$0xff] }
 0x1e4   : > { %v1202_v25 = vpack.c.bf16 %v743_v23, %v741_v22  ;;  %v818_v22 = vld [vmem:[#allocation3 + $0x3f0] sm:$0xff] }
 0x1e5   : > { %v1280_v23 = vpack.c.bf16 %v818_v22, %v816_v16 }
 0x1e6   : > { %1245 = vmatpush1.bf16.msra.mxu1 %v1244_v49  ;;  %1189 = vmatpush1.bf16.msra.mxu0 %v1188_v27  ;;  %v1194_v49 = vpack.c.bf16 %v735_v46, %v733_v45  ;;  %v740_v27 = vld [vmem:[#allocation3 + $0x180] sm:$0xff]  ;;  %v810_v46 = vld [vmem:[#allocation3 + $0x3b0] sm:$0xff] }
 0x1e7   : > { %1247 = vmatprep.subr.bf16.mxu1 %v1246_v51  ;;  %1191 = vmatprep.subr.bf16.mxu0 %v1190_v34  ;;  %v732_v51 = vld [vmem:[#allocation3 + $0x140] sm:$0xff]  ;;  %v745_v34 = vld [vmem:[#allocation3 + $0x1a8] sm:$0xff] }
 0x1e8   : > { %v1206_v37 = vpack.c.bf16 %v747_v35, %v745_v34  ;;  %v808_v45 = vld [vmem:[#allocation3 + $0x3a0] sm:$0xff] }
 0x1e9   : > { %v1272_v47 = vpack.c.bf16 %v810_v46, %v808_v45 }
 0x1ea   : > { %1249 = vmatpush1.bf16.msra.mxu1 %v1248_v10  ;;  %1193 = vmatpush1.bf16.msra.mxu0 %v1192_v42  ;;  %v746_v42 = vld [vmem:[#allocation3 + $0x1b0] sm:$0xff] }
 0x1eb   : > { %1251 = vmatprep.subr.bf16.mxu1 %v1250_v26  ;;  %1195 = vmatprep.subr.bf16.mxu0 %v1194_v49  ;;  %v807_v26 = vld [vmem:[#allocation3 + $0x398] sm:$0xff] }
 0x1ec   : > { %v1266_v29 = vpack.c.bf16 %v807_v26, %v805_v24  ;;  %v751_v49 = vld [vmem:[#allocation3 + $0x1d8] sm:$0xff] }
 0x1ee   : > { %1253 = vmatpush1.bf16.msra.mxu1 %v1252_v30  ;;  %v1204_v30 = vpack.c.bf16 %v742_v28, %v740_v27 }
 0x1ef   : > { %1255 = vmatprep.subr.bf16.mxu1 %v1254_v36  ;;  %v809_v36 = vld [vmem:[#allocation3 + $0x3a8] sm:$0xff] }
 0x1f0   : > { %v1270_v43 = vpack.c.bf16 %v811_v38, %v809_v36 }
 0x1f2   : > { %1257 = vmatpush1.bf16.msra.mxu1 %v1256_v44  ;;  %v1208_v44 = vpack.c.bf16 %v746_v42, %v744_v39 }
 0x1f3   : > { %1259 = vmatprep.subr.bf16.mxu1 %v1258_v40  ;;  %v748_v40 = vld [vmem:[#allocation3 + $0x1c0] sm:$0xff] }
 0x2a0   : > { %v576_v53 = vpop.f32.mrb[0].mxu1 }
 0x2a1   : > { %v577_v54 = vadd.f32 %v576_v53, %v501_v52  ;;  %v1141_v55 = vpop.f32.mrb[1].mxu1  ;;  %v734_v52 = vld [vmem:[#allocation3 + $0x150] sm:$0xff] }
 0x2a2   : > { %v796_v55 = vld [vmem:[#allocation3 + $0x340] sm:$0xff] }
 0x2a3   : > { %v580_v56 = vsub.f32 0.0, %v577_v54  ;;  %v1196_v54 = vpack.c.bf16 %v734_v52, %v732_v51  ;;  %v815_v52 = vld [vmem:[#allocation3 + $0x3d8] sm:$0xff] }
 0x2a5   : > { %v1100_v57 = vclamps-f32 %v580_v56, 60.0  ;;  %v798_v56 = vld [vmem:[#allocation3 + $0x350] sm:$0xff]  ;;  %1197 = vmatpush1.bf16.msra.mxu0 %v1196_v54 }
 0x2a6   : > { %v750_v54 = vld [vmem:[#allocation3 + $0x1d0] sm:$0xff] }
 0x2a7   : > { %v583_v58 = vmul.f32 1.442695, %v1100_v57  ;;  %v1260_v57 = vpack.c.bf16 %v798_v56, %v796_v55  ;;  %v1274_v55 = vpack.c.bf16 %v815_v52, %v813_v50  ;;  %v1212_v56 = vpack.c.bf16 %v750_v54, %v748_v40 }
 0x2a9   : > { %1314 = vpow2.f32 %v583_v58  ;;  %v737_v58 = vld [vmem:[#allocation3 + $0x168] sm:$0xff]  ;;  %1261 = vmatpush1.bf16.msra.mxu1 %v1260_v57  ;;  %v812_v57 = vld [vmem:[#allocation3 + $0x3c0] sm:$0xff] }
 0x2aa   : > { %1263 = vmatprep.subr.bf16.mxu1 %v1262_v7 }
 0x2ad   : > { %1265 = vmatpush1.bf16.msra.mxu1 %v1264_v17 }
 0x2ae   : > { %1267 = vmatprep.subr.bf16.mxu1 %v1266_v29 }
 0x2b1   : > { %1269 = vmatpush1.bf16.msra.mxu1 %v1268_v33 }
 0x2b2   : > { %1271 = vmatprep.subr.bf16.mxu1 %v1270_v43 }
 0x2b3   : > { %v1315_v59 = vpop.eup %1314 }
 0x2b4   : > { %v585_v63 = vadd.f32 1.0, %v1315_v59  ;;  %v739_v59 = vld [vmem:[#allocation3 + $0x178] sm:$0xff] }
 0x2b5   : > { %v1198_v61 = vpack.c.bf16 %v739_v59, %v737_v58  ;;  %1273 = vmatpush1.bf16.msra.mxu1 %v1272_v47  ;;  %v814_v58 = vld [vmem:[#allocation3 + $0x3d0] sm:$0xff]  ;;  %v753_v59 = vld [vmem:[#allocation3 + $0x1e8] sm:$0xff] }
 0x2b6   : > { %1316 = vrcp.f32 %v585_v63  ;;  %v736_v63 = vld [vmem:[#allocation3 + $0x160] sm:$0xff]  ;;  %v1276_v60 = vpack.c.bf16 %v814_v58, %v812_v57  ;;  %1275 = vmatprep.subr.bf16.mxu1 %v1274_v55 }
 0x2b7   : > { %v1200_v10 = vpack.c.bf16 %v738_v3, %v736_v63  ;;  %1199 = vmatprep.subr.bf16.mxu0 %v1198_v61  ;;  %v755_v61 = vld [vmem:[#allocation3 + $0x1f8] sm:$0xff] }
 0x2b8   : > { %v819_v63 = vld [vmem:[#allocation3 + $0x3f8] sm:$0xff]  ;;  %v1214_v3 = vpack.c.bf16 %v755_v61, %v753_v59 }
 0x2b9   : > { %1201 = vmatpush1.bf16.msra.mxu0 %v1200_v10  ;;  %v1278_v7 = vpack.c.bf16 %v819_v63, %v817_v62  ;;  %v752_v10 = vld [vmem:[#allocation3 + $0x1e0] sm:$0xff]  ;;  %1277 = vmatpush1.bf16.msra.mxu1 %v1276_v60 }
 0x2ba   : > { %1203 = vmatprep.subr.bf16.mxu0 %v1202_v25  ;;  %v1216_v17 = vpack.c.bf16 %v754_v11, %v752_v10 }
 0x2bb   : > { %1279 = vmatprep.subr.bf16.mxu1 %v1278_v7 }
 0x2bd   : > { %1205 = vmatpush1.bf16.msra.mxu0 %v1204_v30  ;;  %1281 = vmatpush1.bf16.msra.mxu1 %v1280_v23 }
 0x2be   : > { %1207 = vmatprep.subr.bf16.mxu0 %v1206_v37 }
 0x2c0   : > { %v1317_v48 = vpop.eup %1316 }
 0x2c1   : > { %v1566_v53 = vrot.slane %v1317_v48, %v1563_v41  ;;  %v749_v48 = vld [vmem:[#allocation3 + $0x1c8] sm:$0xff]  ;;  %1209 = vmatpush1.bf16.msra.mxu0 %v1208_v44 }
 0x2c2   : > { %v1210_v51 = vpack.c.bf16 %v751_v49, %v749_v48 }
 0x2c3   : > { %596 = vbcast.lane.b32.xlu1 %v1566_v53, 264  ;;  %592 = vbcast.lane.b32.xlu0 %v1566_v53, 256 }
 0x2c4   : > { %1211 = vmatprep.subr.bf16.mxu0 %v1210_v51 }
 0x2c5   : > { %1213 = vmatpush1.bf16.msra.mxu0 %v1212_v56 }
 0x2c6   : > { %1215 = vmatprep.subr.bf16.mxu0 %v1214_v3 }
 0x2c7   : > { %600 = vbcast.lane.b32.xlu1 %v1566_v53, 272  ;;  %608 = vbcast.lane.b32.xlu0 %v1566_v53, 288 }
 0x2c9   : > { %1217 = vmatpush1.bf16.msra.mxu0 %v1216_v17 }
 0x2cb   : > { %604 = vbcast.lane.b32.xlu1 %v1566_v53, 280  ;;  %616 = vbcast.lane.b32.xlu0 %v1566_v53, 304 }
 0x2cf   : > { %612 = vbcast.lane.b32.xlu1 %v1566_v53, 296 }
 0x2d3   : > { %620 = vbcast.lane.b32.xlu1 %v1566_v53, 312 }
 0x335   : > { %v597_v24 = vpop.permute.xlu1 %596  ;;  %v593_v25 = vpop.permute.xlu0 %592 }
 0x336   : > { %v1577_v26 = vmul.f32 %v597_v24, %v1480_v5  ;;  %v1580_v53 = vmul.f32 %v597_v24, %v1482_v6  ;;  %v1583_v27 = vmul.f32 %v593_v25, %v1470_v0  ;;  %v1586_v28 = vmul.f32 %v593_v25, %v1472_v1 }
 0x338   : > { %v664_v5 = vadd.f32 %v1577_v26, %v1583_v27  ;;  %v677_v6 = vadd.f32 %v1580_v53, %v1586_v28 }
 0x339   : > { %v601_v29 = vpop.permute.xlu1 %600  ;;  %v609_v32 = vpop.permute.xlu0 %608 }
 0x33a   : > { %v1589_v30 = vmul.f32 %v601_v29, %v1474_v2  ;;  %v1592_v31 = vmul.f32 %v601_v29, %v1478_v4  ;;  %v1611_v36 = vmul.f32 %v609_v32, %v1494_v12  ;;  %v1614_v37 = vmul.f32 %v609_v32, %v1496_v13 }
 0x33c   : > { %v638_v0 = vmax.f32 %v1583_v27, %v1589_v30  ;;  %v651_v1 = vmax.f32 %v1586_v28, %v1592_v31  ;;  %v665_v2 = vadd.f32 %v664_v5, %v1589_v30  ;;  %v678_v34 = vadd.f32 %v677_v6, %v1592_v31 }
 0x33d   : > { %v605_v33 = vpop.permute.xlu1 %604  ;;  %v617_v42 = vpop.permute.xlu0 %616 }
 0x33e   : > { %v1605_v4 = vmul.f32 %v605_v33, %v1486_v8  ;;  %v1608_v35 = vmul.f32 %v605_v33, %v1488_v9  ;;  %v640_v43 = vmax.f32 %v638_v0, %v1611_v36  ;;  %v653_v44 = vmax.f32 %v651_v1, %v1614_v37 }
 0x33f   : > { %v1633_v48 = vmul.f32 %v617_v42, %v1506_v18  ;;  %v1636_v49 = vmul.f32 %v617_v42, %v1508_v19 }
 0x340   : > { %v666_v38 = vadd.f32 %v665_v2, %v1605_v4  ;;  %v679_v39 = vadd.f32 %v678_v34, %v1608_v35  ;;  %v639_v46 = vmax.f32 %v1577_v26, %v1605_v4  ;;  %v652_v47 = vmax.f32 %v1580_v53, %v1608_v35 }
 0x341   : > { %v613_v8 = vpop.permute.xlu1 %612  ;;  %v642_v55 = vmax.f32 %v640_v43, %v1633_v48  ;;  %v655_v56 = vmax.f32 %v653_v44, %v1636_v49  ;;  %v821_v44 = vstv %s820_s25 }
 0x342   : > { %v1621_v45 = vmul.f32 %v613_v8, %v1498_v14  ;;  %v1624_v9 = vmul.f32 %v613_v8, %v1500_v15  ;;  %v667_v12 = vadd.f32 %v666_v38, %v1611_v36  ;;  %v680_v13 = vadd.f32 %v679_v39, %v1614_v37 }
 0x344   : > { %v668_v14 = vadd.f32 %v667_v12, %v1621_v45  ;;  %v681_v15 = vadd.f32 %v680_v13, %v1624_v9  ;;  %v641_v50 = vmax.f32 %v639_v46, %v1621_v45  ;;  %v654_v51 = vmax.f32 %v652_v47, %v1624_v9 }
 0x345   : > { %v621_v52 = vpop.permute.xlu1 %620 }
 0x346   : > { %v1643_v40 = vmul.f32 %v621_v52, %v1510_v20  ;;  %v1646_v54 = vmul.f32 %v621_v52, %v1512_v21  ;;  %v669_v18 = vadd.f32 %v668_v14, %v1633_v48  ;;  %v682_v19 = vadd.f32 %v681_v15, %v1636_v49 }
 0x348   : > { %v643_v57 = vmax.f32 %v641_v50, %v1643_v40  ;;  %v656_v58 = vmax.f32 %v654_v51, %v1646_v54  ;;  %v670_v59 = vadd.f32 %v669_v18, %v1643_v40  ;;  %v683_v20 = vadd.f32 %v682_v19, %v1646_v54 }
 0x34a   : > { %v644_v60 = vmax.f32 %v642_v55, %v643_v57  ;;  %v657_v61 = vmax.f32 %v655_v56, %v656_v58  ;;  %v671_v21 = vrot.slane %v670_v59, 4  ;;  %v684_v62 = vrot.slane %v683_v20, 4 }
 0x34c   : > { %v645_v63 = vrot.slane %v644_v60, 4  ;;  %v658_v3 = vrot.slane %v657_v61, 4  ;;  %v672_v7 = vadd.f32 %v671_v21, %v670_v59  ;;  %v685_v10 = vadd.f32 %v684_v62, %v683_v20 }
 0x34e   : > { %v646_v11 = vmax.f32 %v644_v60, %v645_v63  ;;  %v673_v16 = vrot.slane %v672_v7, 2  ;;  %v659_v17 = vmax.f32 %v657_v61, %v658_v3  ;;  %v686_v22 = vrot.slane %v685_v10, 2 }
 0x350   : > { %v647_v23 = vrot.slane %v646_v11, 2  ;;  %v674_v24 = vadd.f32 %v673_v16, %v672_v7  ;;  %v660_v25 = vrot.slane %v659_v17, 2  ;;  %v687_v29 = vadd.f32 %v686_v22, %v685_v10 }
 0x352   : > { %v661_v32 = vmax.f32 %v659_v17, %v660_v25  ;;  %v688_v5 = vrot.slane %v687_v29, 1  ;;  %v648_v6 = vmax.f32 %v646_v11, %v647_v23  ;;  %v675_v0 = vrot.slane %v674_v24, 1 }
 0x354   : > { %v662_v1 = vrot.slane %v661_v32, 1  ;;  %v689_v33 = vadd.f32 %v688_v5, %v687_v29  ;;  %v649_v2 = vrot.slane %v648_v6, 1  ;;  %v676_v34 = vadd.f32 %v675_v0, %v674_v24 }
 0x356   : > { %v663_v38 = vmax.f32 %v661_v32, %v662_v1  ;;  %v691_v39 = vmul.f32 0.015625, %v689_v33  ;;  %v650_v42 = vmax.f32 %v648_v6, %v649_v2  ;;  %v690_v43 = vmul.f32 0.015625, %v676_v34 }
 0x358   : > { %886 = vmatprep.mubr.f32.mxu0 %v663_v38  ;;  %957 = vmatprep.mubr.f32.mxu1 %v691_v39 }
 0x359   : > { %887 = vmatmul.mubr.f32.vlgmr.msra.gmra.mrb[2].mxu0 %v650_v42  ;;  %958 = vmatmul.mubr.f32.vlgmr.msra.gmra.mrb[2].mxu1 %v690_v43 }
 0x42c   : > { %v888_v8 = vpop.f32.mrb[2].mxu0  ;;  %v959_v12 = vpop.f32.mrb[2].mxu1 }
 0x42d   : > { %v889_v13 = vadd.f32 %v888_v8, %v821_v44  ;;  %v890_v46 = vpop.f32.mrb[3].mxu0  ;;  %v961_v47 = vpop.f32.mrb[3].mxu1 }
 0x42e   : > { %v891_v14 = vadd.f32 %v890_v46, %v821_v44 }
 0x42f   : > { %v960_v15 = vadd.f32 %v959_v12, %v889_v13 }
 0x430   : > { %v962_v50 = vadd.f32 %v961_v47, %v891_v14 }
 0x431   : > { %v964_v51 = vsub.f32 0.0, %v960_v15 }
 0x432   : > { %v965_v52 = vsub.f32 0.0, %v962_v50 }
 0x433   : > { %v1101_v18 = vclamps-f32 %v964_v51, 60.0 }
 0x434   : > { %v1102_v19 = vclamps-f32 %v965_v52, 60.0 }
 0x435   : > { %v970_v55 = vmul.f32 1.442695, %v1101_v18 }
 0x436   : > { %v972_v56 = vmul.f32 1.442695, %v1102_v19 }
 0x437   : > { %1318 = vpow2.f32 %v970_v55 }
 0x438   : > { %1320 = vpow2.f32 %v972_v56 }
 0x441   : > { %v1319_v57 = vpop.eup %1318 }
 0x442   : > { %v1321_v58 = vpop.eup %1320  ;;  %v974_v59 = vadd.f32 1.0, %v1319_v57 }
 0x443   : > { %v975_v20 = vadd.f32 1.0, %v1321_v58 }
 0x444   : > { %1322 = vrcp.f32 %v974_v59 }
 0x445   : > { %1324 = vrcp.f32 %v975_v20 }
 0x44e   : > { %v1323_v60 = vpop.eup %1322 }
 0x44f   : > { %v1325_v61 = vpop.eup %1324  ;;  %v981_v21 = vrot.slane %v1323_v60, %v1563_v41 }
 0x450   : > { %v985_v62 = vrot.slane %v1325_v61, %v1563_v41 }
 0x451   : > { %v986_v63 = vmul.f32 %v981_v21, %v1583_v27  ;;  %v988_v3 = vmul.f32 %v981_v21, %v1577_v26  ;;  %v990_v7 = vmul.f32 %v981_v21, %v1589_v30  ;;  %v992_v10 = vmul.f32 %v981_v21, %v1605_v4 }
 0x452   : > { %v994_v11 = vmul.f32 %v981_v21, %v1611_v36  ;;  %v996_v16 = vmul.f32 %v981_v21, %v1621_v45  ;;  %v998_v17 = vmul.f32 %v981_v21, %v1633_v48  ;;  %v1000_v41 = vmul.f32 %v981_v21, %v1643_v40 }
 0x453   : > { %1002 = vst [vmem:[%s1662_s6] sm:$0xff] %v986_v63  ;;  %1004 = vst [vmem:[%s1662_s6 + $0x10] sm:$0xff] %v988_v3  ;;  %v987_v26 = vmul.f32 %v985_v62, %v1586_v28  ;;  %v989_v27 = vmul.f32 %v985_v62, %v1580_v53  ;;  %v991_v30 = vmul.f32 %v985_v62, %v1592_v31 }
 0x454   : > { %1006 = vst [vmem:[%s1662_s6 + $0x20] sm:$0xff] %v990_v7  ;;  %1008 = vst [vmem:[%s1662_s6 + $0x30] sm:$0xff] %v992_v10  ;;  %v993_v4 = vmul.f32 %v985_v62, %v1608_v35  ;;  %v995_v36 = vmul.f32 %v985_v62, %v1614_v37  ;;  %v997_v45 = vmul.f32 %v985_v62, %v1624_v9 }
 0x455   : > { %1010 = vst [vmem:[%s1662_s6 + $0x40] sm:$0xff] %v994_v11  ;;  %1012 = vst [vmem:[%s1662_s6 + $0x50] sm:$0xff] %v996_v16  ;;  %v999_v28 = vmul.f32 %v985_v62, %v1636_v49  ;;  %v1001_v48 = vmul.f32 %v985_v62, %v1646_v54 }
 0x456   : > { %1014 = vst [vmem:[%s1662_s6 + $0x60] sm:$0xff] %v998_v17  ;;  %1016 = vst [vmem:[%s1662_s6 + $0x70] sm:$0xff] %v1000_v41 }
 0x457   : > { %1003 = vst [vmem:[%s1662_s6 + $0x8] sm:$0xff] %v987_v26  ;;  %1005 = vst [vmem:[%s1662_s6 + $0x18] sm:$0xff] %v989_v27 }
 0x458   : > { %1007 = vst [vmem:[%s1662_s6 + $0x28] sm:$0xff] %v991_v30  ;;  %1009 = vst [vmem:[%s1662_s6 + $0x38] sm:$0xff] %v993_v4 }
 0x459   : > { %1011 = vst [vmem:[%s1662_s6 + $0x48] sm:$0xff] %v995_v36  ;;  %1013 = vst [vmem:[%s1662_s6 + $0x58] sm:$0xff] %v997_v45 }
 0x45a   : > { %1015 = vst [vmem:[%s1662_s6 + $0x68] sm:$0xff] %v999_v28  ;;  %1017 = vst [vmem:[%s1662_s6 + $0x78] sm:$0xff] %v1001_v48 }
 0x45b PF: > { %s19_s26 = sadd.s32 1, %s1364_s26  }
 0x45c   : > { %p16_p3 = scmp.ge.s32.totalorder %s19_s26, 4  }
 0x45e   :  { %18 = sbr.rel (!%p16_p3) target bundleno = 3 (0x3), region = 83 }
 0x465   :  { %1039 = vsyncpa [#allocation4], 1 }
 0x466   :  { %1041 = vsyncpa [#allocation4 + $0x1], 1 }

</bundles_post_ra>
